<compile_context>
chip_gen: v7x
topology: tpu7x:2x2x1
jax: 0.10.0
libtpu: 0.0.40
codegen_flags: <defaults>
</compile_context>

<pallas_src>
import functools

import jax
import jax.numpy as jnp
from jax.experimental import pallas as pl
from jax.experimental.pallas import tpu as pltpu


def _barlow_twins_kernel(z1_ref, z2_ref, r1c_ref, m1r1c_ref, r2b_ref, m2r2_ref,
                         out_ref, gram_acc, *, lambda_coeff, precision):
    # All grid-position reads stay at the top level (outside pl.when bodies) so
    # both the Mosaic and the interpret lowerings handle them.
    i = pl.program_id(0)
    j = pl.program_id(1)
    b = pl.program_id(2)
    nb = pl.num_programs(2)
    is_diag = i == j

    # Raw Gram tile on the MXU, contracting directly over the batch axis
    # (no transposed copy of the activation feeding the MXU).
    g = jax.lax.dot_general(
        z1_ref[...], z2_ref[...],
        dimension_numbers=(((0,), (0,)), ((), ())),
        preferred_element_type=jnp.float32,
        precision=precision)

    @pl.when(b == 0)
    def _init():
        gram_acc[...] = g          # first step: plain store, no read-modify-write

    @pl.when(b != 0)
    def _accum():
        gram_acc[...] += g

    @pl.when(b == nb - 1)
    def _finalize():
        td = gram_acc.shape[0]
        lam = jnp.float32(lambda_coeff)
        # C = r1_col * (r2/B)_row * G - (mu1*r1)_col * (mu2*r2)_row
        # (the 1/B is pre-folded into the r2 row vector outside the kernel).
        c = (gram_acc[...] * (r1c_ref[...] * r2b_ref[...])
             - m1r1c_ref[...] * m2r2_ref[...])
        c2 = c * c
        eye = (jax.lax.broadcasted_iota(jnp.int32, (td, td), 0) ==
               jax.lax.broadcasted_iota(jnp.int32, (td, td), 1))
        # lambda*C^2 everywhere; on diagonal tiles replace diag terms by (C-1)^2.
        contrib = lam * c2 + jnp.where(eye & is_diag,
                                       (c - 1.0) ** 2 - lam * c2,
                                       jnp.float32(0.0))
        total = jnp.sum(contrib)
        # Masked full-block write of the scalar partial into element [0, 0].
        r_io = jax.lax.broadcasted_iota(jnp.int32, out_ref.shape, 0)
        c_io = jax.lax.broadcasted_iota(jnp.int32, out_ref.shape, 1)
        out_ref[...] = jnp.where((r_io == 0) & (c_io == 0), total,
                                 jnp.float32(0.0))


def _pick_tile(dim, target, granule):
    """Largest divisor of `dim` that is a multiple of `granule` and <= target."""
    t = (min(target, dim) // granule) * granule
    while t >= granule:
        if dim % t == 0:
            return t
        t -= granule
    return dim


def barlow_twins_loss(z1, z2, *, lambda_coeff=0.005, tile_d=1024, tile_b=512,
                      mxu_dtype=None, precision=None,
                      vmem_limit_bytes=48 * 1024 * 1024):
    """Barlow Twins loss for z1, z2 of shape (batch, z_dim).

    mxu_dtype: dtype fed to the MXU Gram accumulation.  Defaults to bfloat16
      for float32 inputs (native MXU speed, half the HBM traffic); statistics
      and the normalization always stay in f32.  Pass jnp.float32 together with
      precision=jax.lax.Precision.HIGHEST for a bit-tight (slow) path.
    """
    assert z1.shape == z2.shape and z1.ndim == 2
    B, D = z1.shape
    assert B >= 2, "std(ddof=1) needs batch >= 2"

    # ---- Column-statistics pre-pass: plain XLA, memory-bound, two-pass. -----
    z1f = z1.astype(jnp.float32)
    z2f = z2.astype(jnp.float32)
    mu1 = jnp.mean(z1f, axis=0)
    mu2 = jnp.mean(z2f, axis=0)
    var1 = jnp.sum(jnp.square(z1f - mu1), axis=0) / jnp.float32(B - 1)
    var2 = jnp.sum(jnp.square(z2f - mu2), axis=0) / jnp.float32(B - 1)
    # NOTE: zero-variance columns give inf/NaN, same as the PyTorch reference.
    r1 = jax.lax.rsqrt(var1)
    r2 = jax.lax.rsqrt(var2)

    # ---- MXU dtype: bf16 Gram (f32 accumulation) for f32 inputs by default.
    if mxu_dtype is None:
        mxu_dtype = jnp.bfloat16 if z1.dtype == jnp.float32 else z1.dtype
    z1k = z1.astype(mxu_dtype)
    z2k = z2.astype(mxu_dtype)

    # ---- Pad to hardware granules (features -> lanes, batch -> sublanes). ---
    itemsize = jnp.dtype(mxu_dtype).itemsize
    b_gran = max(8, 32 // itemsize)            # 8 f32 / 16 bf16 / 32 int8
    Dp = ((D + 127) // 128) * 128
    Bp = ((B + b_gran - 1) // b_gran) * b_gran
    pad_d, pad_b = Dp - D, Bp - B
    if pad_d or pad_b:
        # Zero rows don't change the Gram; zero feature columns handled below.
        z1k = jnp.pad(z1k, ((0, pad_b), (0, pad_d)))
        z2k = jnp.pad(z2k, ((0, pad_b), (0, pad_d)))

    inv_b = jnp.float32(1.0 / B)               # true batch size, not padded
    # Padded columns get r = 0 and mu*r = 0, so C is exactly 0 there.
    r1_col = jnp.pad(r1, (0, pad_d)).reshape(Dp, 1)
    m1r1_col = jnp.pad(mu1 * r1, (0, pad_d)).reshape(Dp, 1)
    r2b_row = (jnp.pad(r2, (0, pad_d)) * inv_b).reshape(1, Dp)
    m2r2_row = jnp.pad(mu2 * r2, (0, pad_d)).reshape(1, Dp)

    td = _pick_tile(Dp, tile_d, 128)           # feature tile (lanes); ti == tj
    tb = _pick_tile(Bp, tile_b, b_gran)        # batch tile (MXU contraction)
    n_d = Dp // td
    n_b = Bp // tb

    kernel = functools.partial(_barlow_twins_kernel,
                               lambda_coeff=float(lambda_coeff),
                               precision=precision)

    partials = pl.pallas_call(
        kernel,
        out_shape=jax.ShapeDtypeStruct((n_d * 8, n_d * 128), jnp.float32),
        grid_spec=pltpu.PrefetchScalarGridSpec(
            num_scalar_prefetch=0,
            grid=(n_d, n_d, n_b),              # (i, j, batch-reduction last)
            in_specs=[
                pl.BlockSpec((tb, td), lambda i, j, b: (b, i)),   # z1 tile
                pl.BlockSpec((tb, td), lambda i, j, b: (b, j)),   # z2 tile
                pl.BlockSpec((td, 1), lambda i, j, b: (i, 0)),    # r1 (col)
                pl.BlockSpec((td, 1), lambda i, j, b: (i, 0)),    # mu1*r1 (col)
                pl.BlockSpec((1, td), lambda i, j, b: (0, j)),    # r2/B (row)
                pl.BlockSpec((1, td), lambda i, j, b: (0, j)),    # mu2*r2 (row)
            ],
            # One tiny per-(i, j) partial block, written at the last b step.
            out_specs=pl.BlockSpec((8, 128), lambda i, j, b: (i, j)),
            scratch_shapes=[pltpu.VMEM((td, td), jnp.float32)],   # Gram acc
        ),
        compiler_params=pltpu.CompilerParams(
            # i, j are independent (shardable across TensorCores); the batch
            # axis is a reduction and stays "arbitrary".
            dimension_semantics=("parallel", "parallel", "arbitrary"),
            vmem_limit_bytes=vmem_limit_bytes),
        cost_estimate=pl.CostEstimate(
            flops=2 * Bp * Dp * Dp,
            transcendentals=0,
            bytes_accessed=(2 * n_d * Bp * Dp * itemsize
                            + n_d * n_d * 8 * 128 * 4)),
    )(z1k, z2k, r1_col, m1r1_col, r2b_row, m2r2_row)

    loss = jnp.sum(partials)
    if pad_d:
        # Each padded diagonal entry contributed exactly (0 - 1)^2 = 1.
        loss = loss - jnp.float32(pad_d)
    return loss


def _reference_loss(z1, z2, lambda_coeff=0.005):
    """Plain-JAX reference mirroring the PyTorch module."""
    z1 = z1.astype(jnp.float32)
    z2 = z2.astype(jnp.float32)
    B = z1.shape[0]
    z1n = (z1 - jnp.mean(z1, axis=0)) / jnp.std(z1, axis=0, ddof=1)
    z2n = (z2 - jnp.mean(z2, axis=0)) / jnp.std(z2, axis=0, ddof=1)
    cc = jnp.matmul(z1n.T, z2n, precision=jax.lax.Precision.HIGHEST) / B
    on_diag = jnp.sum((jnp.diagonal(cc) - 1.0) ** 2)
    off_diag = jnp.sum(cc ** 2) - jnp.sum(jnp.diagonal(cc) ** 2)
    return on_diag + lambda_coeff * off_diag


if __name__ == "__main__":
    batch_size = 8
    z_dim = 128          # matches the module's default z_dim=128
    lambda_coeff = 0.005

    key = jax.random.PRNGKey(0)
    k1, k2, k3, k4 = jax.random.split(key, 4)
    z1 = jax.random.normal(k1, (batch_size, z_dim), dtype=jnp.float32)
    z2 = jax.random.normal(k2, (batch_size, z_dim), dtype=jnp.float32)

    ref = _reference_loss(z1, z2, lambda_coeff)

    # Production (fast) path: bf16 Gram on the MXU, f32 stats/normalization.
    loss_fast = jax.block_until_ready(
        barlow_twins_loss(z1, z2, lambda_coeff=lambda_coeff))
    assert jnp.allclose(loss_fast, ref, rtol=2e-2, atol=2e-2), (loss_fast, ref)

    # Exact path (f32 MXU, HIGHEST precision): tight correctness check only.
    loss_exact = jax.block_until_ready(
        barlow_twins_loss(z1, z2, lambda_coeff=lambda_coeff,
                          mxu_dtype=jnp.float32,
                          precision=jax.lax.Precision.HIGHEST))
    assert jnp.allclose(loss_exact, ref, rtol=1e-3, atol=1e-3), (loss_exact, ref)

    # Awkward shape: exercises the batch/feature zero-padding path.
    z1b = jax.random.normal(k3, (10, 160), dtype=jnp.float32)
    z2b = jax.random.normal(k4, (10, 160), dtype=jnp.float32)
    loss_pad = jax.block_until_ready(
        barlow_twins_loss(z1b, z2b, lambda_coeff=lambda_coeff))
    ref_pad = _reference_loss(z1b, z2b, lambda_coeff)
    assert jnp.allclose(loss_pad, ref_pad, rtol=2e-2, atol=2e-2), (loss_pad, ref_pad)

    print("KERNEL_OK")
</pallas_src>

<mosaic_0001>
module attributes {stable_mosaic.version = 11 : i64} {
  func.func @_barlow_twins_kernel(%arg0: i32, %arg1: i32, %arg2: i32, %arg3: memref<16x128xbf16, #tpu.memory_space<vmem>>, %arg4: memref<16x128xbf16, #tpu.memory_space<vmem>>, %arg5: memref<128x1xf32, #tpu.memory_space<vmem>>, %arg6: memref<128x1xf32, #tpu.memory_space<vmem>>, %arg7: memref<1x128xf32, #tpu.memory_space<vmem>>, %arg8: memref<1x128xf32, #tpu.memory_space<vmem>>, %arg9: memref<8x128xf32, #tpu.memory_space<vmem>>, %arg10: memref<128x128xf32, #tpu.memory_space<vmem>>) attributes {dimension_semantics = [#tpu.dimension_semantics<parallel>, #tpu.dimension_semantics<parallel>, #tpu.dimension_semantics<arbitrary>], iteration_bounds = array<i64: 1, 1, 1>, scalar_prefetch = 0 : i64, scratch_operands = 1 : i64, tpu.core_type = #tpu.core_type<tc>, window_params = [{transform_indices = @transform_0, window_bounds = array<i64: 16, 128>}, {transform_indices = @transform_1, window_bounds = array<i64: 16, 128>}, {transform_indices = @transform_2, window_bounds = array<i64: 128, 1>}, {transform_indices = @transform_3, window_bounds = array<i64: 128, 1>}, {transform_indices = @transform_4, window_bounds = array<i64: 1, 128>}, {transform_indices = @transform_5, window_bounds = array<i64: 1, 128>}, {transform_indices = @transform_6, window_bounds = array<i64: 8, 128>}]} {
    %0 = arith.cmpi eq, %arg0, %arg1 : i32
    %c0 = arith.constant 0 : index
    %c0_0 = arith.constant 0 : index
    %1 = vector.load %arg3[%c0, %c0_0] : memref<16x128xbf16, #tpu.memory_space<vmem>>, vector<16x128xbf16>
    %c0_1 = arith.constant 0 : index
    %c0_2 = arith.constant 0 : index
    %2 = vector.load %arg4[%c0_1, %c0_2] : memref<16x128xbf16, #tpu.memory_space<vmem>>, vector<16x128xbf16>
    %cst = arith.constant dense<0.000000e+00> : vector<128x128xf32>
    %3 = tpu.matmul %1, %2, %cst {dimension_numbers = #tpu.dot_dimension_numbers<[0], [0], [1], [1], [0, 1, 1, 1], [], []>} : vector<16x128xbf16>, vector<16x128xbf16>, vector<128x128xf32> -> vector<128x128xf32>
    %c0_i32 = arith.constant 0 : i32
    %4 = arith.cmpi eq, %arg2, %c0_i32 : i32
    %5 = arith.extui %4 : i1 to i32
    %c0_i32_3 = arith.constant 0 : i32
    %6 = arith.cmpi ne, %5, %c0_i32_3 : i32
    scf.if %6 {
      %c0_8 = arith.constant 0 : index
      %c0_9 = arith.constant 0 : index
      %13 = vector.load %arg10[%c0_8, %c0_9] : memref<128x128xf32, #tpu.memory_space<vmem>>, vector<128x128xf32>
      tpu.vector_store %arg10[%c0_8, %c0_9], %3 {strides = array<i32>} : memref<128x128xf32, #tpu.memory_space<vmem>>, vector<128x128xf32>,
    } else {
    }
    %c0_i32_4 = arith.constant 0 : i32
    %7 = arith.cmpi ne, %arg2, %c0_i32_4 : i32
    %8 = arith.extui %7 : i1 to i32
    %c0_i32_5 = arith.constant 0 : i32
    %9 = arith.cmpi ne, %8, %c0_i32_5 : i32
    scf.if %9 {
      %c0_8 = arith.constant 0 : index
      %c0_9 = arith.constant 0 : index
      %13 = vector.load %arg10[%c0_8, %c0_9] : memref<128x128xf32, #tpu.memory_space<vmem>>, vector<128x128xf32>
      %14 = arith.addf %13, %3 : vector<128x128xf32>
      %c0_10 = arith.constant 0 : index
      %c0_11 = arith.constant 0 : index
      %15 = vector.load %arg10[%c0_10, %c0_11] : memref<128x128xf32, #tpu.memory_space<vmem>>, vector<128x128xf32>
      tpu.vector_store %arg10[%c0_10, %c0_11], %14 {strides = array<i32>} : memref<128x128xf32, #tpu.memory_space<vmem>>, vector<128x128xf32>,
    } else {
    }
    %c0_i32_6 = arith.constant 0 : i32
    %10 = arith.cmpi eq, %arg2, %c0_i32_6 : i32
    %11 = arith.extui %10 : i1 to i32
    %c0_i32_7 = arith.constant 0 : i32
    %12 = arith.cmpi ne, %11, %c0_i32_7 : i32
    scf.if %12 {
      %c0_8 = arith.constant 0 : index
      %c0_9 = arith.constant 0 : index
      %13 = vector.load %arg10[%c0_8, %c0_9] : memref<128x128xf32, #tpu.memory_space<vmem>>, vector<128x128xf32>
      %c0_10 = arith.constant 0 : index
      %c0_11 = arith.constant 0 : index
      %14 = vector.load %arg5[%c0_10, %c0_11] : memref<128x1xf32, #tpu.memory_space<vmem>>, vector<128x1xf32>
      %c0_12 = arith.constant 0 : index
      %c0_13 = arith.constant 0 : index
      %15 = vector.load %arg7[%c0_12, %c0_13] : memref<1x128xf32, #tpu.memory_space<vmem>>, vector<1x128xf32>
      %16 = vector.broadcast %14 : vector<128x1xf32> to vector<128x128xf32>
      %17 = vector.broadcast %15 : vector<1x128xf32> to vector<128x128xf32>
      %18 = arith.mulf %16, %17 : vector<128x128xf32>
      %19 = arith.mulf %13, %18 : vector<128x128xf32>
      %c0_14 = arith.constant 0 : index
      %c0_15 = arith.constant 0 : index
      %20 = vector.load %arg6[%c0_14, %c0_15] : memref<128x1xf32, #tpu.memory_space<vmem>>, vector<128x1xf32>
      %c0_16 = arith.constant 0 : index
      %c0_17 = arith.constant 0 : index
      %21 = vector.load %arg8[%c0_16, %c0_17] : memref<1x128xf32, #tpu.memory_space<vmem>>, vector<1x128xf32>
      %22 = vector.broadcast %20 : vector<128x1xf32> to vector<128x128xf32>
      %23 = vector.broadcast %21 : vector<1x128xf32> to vector<128x128xf32>
      %24 = arith.mulf %22, %23 : vector<128x128xf32>
      %25 = arith.subf %19, %24 : vector<128x128xf32>
      %26 = arith.mulf %25, %25 : vector<128x128xf32>
      %27 = tpu.iota {dimensions = array<i32: 0>} : vector<128x128xi32>
      %28 = tpu.iota {dimensions = array<i32: 1>} : vector<128x128xi32>
      %29 = arith.cmpi eq, %27, %28 : vector<128x128xi32>
      %cst_18 = arith.constant 5.000000e-03 : f32
      %30 = vector.broadcast %cst_18 : f32 to vector<128x128xf32>
      %31 = arith.mulf %30, %26 : vector<128x128xf32>
      %32 = vector.broadcast %0 : i1 to vector<128x128xi1>
      %33 = arith.andi %29, %32 : vector<128x128xi1>
      %cst_19 = arith.constant 1.000000e+00 : f32
      %34 = vector.broadcast %cst_19 : f32 to vector<128x128xf32>
      %35 = arith.subf %25, %34 : vector<128x128xf32>
      %36 = arith.mulf %35, %35 : vector<128x128xf32>
      %cst_20 = arith.constant 5.000000e-03 : f32
      %37 = vector.broadcast %cst_20 : f32 to vector<128x128xf32>
      %38 = arith.mulf %37, %26 : vector<128x128xf32>
      %39 = arith.subf %36, %38 : vector<128x128xf32>
      %cst_21 = arith.constant 0.000000e+00 : f32
      %40 = vector.broadcast %cst_21 : f32 to vector<128x128xf32>
      %41 = arith.select %33, %39, %40 : vector<128x128xi1>, vector<128x128xf32>
      %42 = arith.addf %31, %41 : vector<128x128xf32>
      %43 = vector.shape_cast %42 : vector<128x128xf32> to vector<1x128x128xf32>
      %cst_22 = arith.constant dense<0.000000e+00> : vector<1xf32>
      %44 = vector.multi_reduction <add>, %43, %cst_22 [1, 2] : vector<1x128x128xf32> to vector<1xf32>
      %45 = vector.shape_cast %44 : vector<1xf32> to vector<1x1x1xf32>
      %46 = vector.extract %45[0, 0, 0] : f32 from vector<1x1x1xf32>
      %47 = tpu.iota {dimensions = array<i32: 0>} : vector<8x128xi32>
      %48 = tpu.iota {dimensions = array<i32: 1>} : vector<8x128xi32>
      %c0_i32_23 = arith.constant 0 : i32
      %49 = vector.broadcast %c0_i32_23 : i32 to vector<8x128xi32>
      %50 = arith.cmpi eq, %47, %49 : vector<8x128xi32>
      %c0_i32_24 = arith.constant 0 : i32
      %51 = vector.broadcast %c0_i32_24 : i32 to vector<8x128xi32>
      %52 = arith.cmpi eq, %48, %51 : vector<8x128xi32>
      %53 = arith.andi %50, %52 : vector<8x128xi1>
      %cst_25 = arith.constant 0.000000e+00 : f32
      %54 = vector.broadcast %46 : f32 to vector<8x128xf32>
      %55 = vector.broadcast %cst_25 : f32 to vector<8x128xf32>
      %56 = arith.select %53, %54, %55 : vector<8x128xi1>, vector<8x128xf32>
      %c0_26 = arith.constant 0 : index
      %c0_27 = arith.constant 0 : index
      %57 = vector.load %arg9[%c0_26, %c0_27] : memref<8x128xf32, #tpu.memory_space<vmem>>, vector<8x128xf32>
      tpu.vector_store %arg9[%c0_26, %c0_27], %56 {strides = array<i32>} : memref<8x128xf32, #tpu.memory_space<vmem>>, vector<8x128xf32>,
    } else {
    }
    return
  }
  func.func @transform_0(%arg0: i32, %arg1: i32, %arg2: i32) -> (i32, i32) {
    %c0_i32 = arith.constant 0 : i32
    return %arg2, %arg0 : i32, i32
  }
  func.func @transform_1(%arg0: i32, %arg1: i32, %arg2: i32) -> (i32, i32) {
    %c0_i32 = arith.constant 0 : i32
    return %arg2, %arg1 : i32, i32
  }
  func.func @transform_2(%arg0: i32, %arg1: i32, %arg2: i32) -> (i32, i32) {
    %c0_i32 = arith.constant 0 : i32
    %c0_i32_0 = arith.constant 0 : i32
    return %arg0, %c0_i32 : i32, i32
  }
  func.func @transform_3(%arg0: i32, %arg1: i32, %arg2: i32) -> (i32, i32) {
    %c0_i32 = arith.constant 0 : i32
    %c0_i32_0 = arith.constant 0 : i32
    return %arg0, %c0_i32 : i32, i32
  }
  func.func @transform_4(%arg0: i32, %arg1: i32, %arg2: i32) -> (i32, i32) {
    %c0_i32 = arith.constant 0 : i32
    %c0_i32_0 = arith.constant 0 : i32
    return %c0_i32, %arg1 : i32, i32
  }
  func.func @transform_5(%arg0: i32, %arg1: i32, %arg2: i32) -> (i32, i32) {
    %c0_i32 = arith.constant 0 : i32
    %c0_i32_0 = arith.constant 0 : i32
    return %c0_i32, %arg1 : i32, i32
  }
  func.func @transform_6(%arg0: i32, %arg1: i32, %arg2: i32) -> (i32, i32) {
    %c0_i32 = arith.constant 0 : i32
    return %arg0, %arg1 : i32, i32
  }
}

</mosaic_0001>

<bundles_post_ra>
// kernel: tpu_custom_call.1
= control target key start
LH: loop header
LB: loop body
LE: loop exit
PB: predicated region body
PF: predicated region fallthrough
CT: control target
= control target key end

     0   :  { %v840_v1 = vmov 0   ;;  %s1190_s0 = inlined_call_operand.vmem [shape: bf16[16,128], index: 0, kind: input, shape index: {}]   ;;  %s1191_s1 = inlined_call_operand.vmem [shape: bf16[16,128], index: 1, kind: input, shape index: {}]   ;;  %s1192_s2 = inlined_call_operand.vmem [shape: f32[128,1], index: 2, kind: input, shape index: {}]   ;;  %s1193_s3 = inlined_call_operand.vmem [shape: f32[128,1], index: 3, kind: input, shape index: {}]   ;;  %s1194_s4 = inlined_call_operand.vmem [shape: f32[1,128], index: 4, kind: input, shape index: {}]   ;;  %s1195_s5 = inlined_call_operand.vmem [shape: f32[1,128], index: 5, kind: input, shape index: {}]   ;;  %s1196_s6 = inlined_call_operand.hbm [shape: f32[8,128], index: 6, kind: output, shape index: {}]  }
   0x1   :  { %v814_v0 = vld [vmem:[%s1190_s0] sm:$0xff]   ;;  %813 = vset.pattern.permute.xlu1 %v840_v1  ;;  %v272_v2 = vld [vmem:[%s1192_s2 + $0x8] sm:$0xff]  ;;  %v273_v3 = vld [vmem:[%s1192_s2 + $0x10] sm:$0xff] }
   0x2   :  { %36 = vxpose.xlu0.c.b16.start.end [1/1] (short) %v814_v0, 128  ;;  %295 = vperm.xlu1 %813, %v272_v2   ;;  %v815_v4 = vld [vmem:[%s1191_s1] sm:$0xff]   ;;  %v407_v6 = vld [vmem:[%s1193_s3 + $0x8] sm:$0xff] }
   0x3   :  { %v406_v5 = vld [vmem:[%s1193_s3] sm:$0xff]  ;;  %788 = vmatprep.subr.bf16.mxu0 %v815_v4  ;;  %806 = vmatprep.subr.bf16.mxu1 %v815_v4 }
   0x4   :  { %789 = vmatpush3.bf16.msra.mxu0 %v815_v4  ;;  %807 = vmatpush3.bf16.msra.mxu1 %v815_v4 }
   0x6   :  { %300 = vperm.xlu1 %813, %v273_v3  }
   0xa   :  { %425 = vperm.xlu1 %813, %v406_v5  }
   0xb   :  { %812 = vset.pattern.permute.xlu0 %v840_v1 }
   0xc   :  { %11 = vsyncpa [#allocation4], 0  ;;  %v274_v7 = vld [vmem:[%s1192_s2 + $0x18] sm:$0xff]  ;;  %v408_v8 = vld [vmem:[%s1193_s3 + $0x10] sm:$0xff]  ;;  %vm58_vm0 = vcmask 130048  }
   0xd   :  { %v275_v9 = vld [vmem:[%s1192_s2 + $0x20] sm:$0xff]  ;;  %v409_v10 = vld [vmem:[%s1193_s3 + $0x18] sm:$0xff]  ;;  %v276_v11 = vld [vmem:[%s1192_s2 + $0x28] sm:$0xff] }
   0xe   :  { %430 = vperm.xlu1 %813, %v407_v6   ;;  %v410_v12 = vld [vmem:[%s1193_s3 + $0x20] sm:$0xff]  ;;  %v277_v14 = vld [vmem:[%s1192_s2 + $0x30] sm:$0xff]  ;;  %v411_v15 = vld [vmem:[%s1193_s3 + $0x28] sm:$0xff] }
   0xf   :  { %v271_v13 = vld [vmem:[%s1192_s2] sm:$0xff]  ;;  %v278_v16 = vld [vmem:[%s1192_s2 + $0x38] sm:$0xff]  ;;  %v412_v17 = vld [vmem:[%s1193_s3 + $0x30] sm:$0xff] }
  0x10   :  { %v279_v18 = vld [vmem:[%s1192_s2 + $0x40] sm:$0xff]  ;;  %v413_v19 = vld [vmem:[%s1193_s3 + $0x38] sm:$0xff]  ;;  %v280_v20 = vld [vmem:[%s1192_s2 + $0x48] sm:$0xff] }
  0x11   :  { %v414_v21 = vld [vmem:[%s1193_s3 + $0x40] sm:$0xff]  ;;  %v281_v22 = vld [vmem:[%s1192_s2 + $0x50] sm:$0xff]  ;;  %v415_v23 = vld [vmem:[%s1193_s3 + $0x48] sm:$0xff] }
  0x12   :  { %305 = vperm.xlu1 %813, %v274_v7   ;;  %v282_v24 = vld [vmem:[%s1192_s2 + $0x58] sm:$0xff]  ;;  %v416_v25 = vld [vmem:[%s1193_s3 + $0x50] sm:$0xff]  ;;  %v283_v26 = vld [vmem:[%s1192_s2 + $0x60] sm:$0xff] }
  0x13   :  { %v417_v27 = vld [vmem:[%s1193_s3 + $0x58] sm:$0xff]  ;;  %v284_v28 = vld [vmem:[%s1192_s2 + $0x68] sm:$0xff]  ;;  %v418_v29 = vld [vmem:[%s1193_s3 + $0x60] sm:$0xff] }
  0x14   :  { %v285_v30 = vld [vmem:[%s1192_s2 + $0x70] sm:$0xff]  ;;  %v419_v31 = vld [vmem:[%s1193_s3 + $0x68] sm:$0xff]  ;;  %v286_v32 = vld [vmem:[%s1192_s2 + $0x78] sm:$0xff] }
  0x15   :  { %v420_v33 = vld [vmem:[%s1193_s3 + $0x70] sm:$0xff]  ;;  %v421_v34 = vld [vmem:[%s1193_s3 + $0x78] sm:$0xff]  ;;  %v761_v7 = vld [vmem:[%s1194_s4] ss:$0 sm:$0xff]  ;;  %s841_s4 = smov [#allocation3]  }
  0x16   :  { %435 = vperm.xlu1 %813, %v408_v8   ;;  %v557_v8 = vlaneseq }
  0x1a   :  { %310 = vperm.xlu1 %813, %v275_v9   ;;  %v762_v9 = vld [vmem:[%s1195_s5] ss:$0 sm:$0xff]  ;;  %s743_s5 = sshll.u32 %s841_s4, 4  ;;  %s744_s5 = int_to_ptr.vmem [resolvable:$true] %s743_s5 }
  0x1b   :  { %s816_s14 = scalar_lea.vmem %s744_s5, 128  ;;  %p821_p1 = scmp.lt.s32.totalorder %s744_s5, %s744_s5 }
  0x1c   :  { %p817_p0 = scmp.ne.s32.totalorder %s744_s5, %s816_s14  ;;  %p822_p2 = scmp.lt.s32.totalorder %s816_s14, %s816_s14 }
  0x1e   :  { %440 = vperm.xlu1 %813, %v409_v10   ;;  %p823_p3 = por %p822_p2, %p821_p1 }
  0x20   :  { %p824_p4 = pnand %p823_p3, %p817_p0 }
  0x22   :  { %315 = vperm.xlu1 %813, %v276_v11  }
  0x26   :  { %445 = vperm.xlu1 %813, %v410_v12  }
  0x27   :  { %290 = vperm.xlu0 %812, %v271_v13  }
  0x2a   :  { %320 = vperm.xlu1 %813, %v277_v14  }
  0x2b   :  { %450 = vperm.xlu0 %812, %v411_v15  }
  0x2e   :  { %325 = vperm.xlu1 %813, %v278_v16   ;;  %v993_v16 = vshrl.u32 %v557_v8, 7 }
  0x2f   :  { %455 = vperm.xlu0 %812, %v412_v17  }
  0x32   :  { %330 = vperm.xlu1 %813, %v279_v18  }
  0x33   :  { %460 = vperm.xlu0 %812, %v413_v19  }
  0x36   :  { %335 = vperm.xlu1 %813, %v280_v20  }
  0x37   :  { %465 = vperm.xlu0 %812, %v414_v21  }
  0x3a   :  { %340 = vperm.xlu1 %813, %v281_v22  }
  0x3b   :  { %470 = vperm.xlu0 %812, %v415_v23  }
  0x3e   :  { %345 = vperm.xlu1 %813, %v282_v24  }
  0x3f   :  { %475 = vperm.xlu0 %812, %v416_v25  }
  0x42   :  { %350 = vperm.xlu1 %813, %v283_v26  }
  0x43   :  { %480 = vperm.xlu0 %812, %v417_v27  }
  0x46   :  { %355 = vperm.xlu1 %813, %v284_v28  }
  0x47   :  { %485 = vperm.xlu0 %812, %v418_v29  }
  0x4a   :  { %360 = vperm.xlu1 %813, %v285_v30  }
  0x4b   :  { %490 = vperm.xlu0 %812, %v419_v31  }
  0x4e   :  { %365 = vperm.xlu1 %813, %v286_v32   ;;  %v1018_v32 = vadd.s32 16, %v993_v16 }
  0x4f   :  { %495 = vperm.xlu0 %812, %v420_v33   ;;  %v1020_v33 = vand.u32 127, %v557_v8 }
  0x51   :  { %vm578_vm1 = vcmp.eq.s32.totalorder %v1018_v32, %v1020_v33  ;;  %vm576_vm2 = vcmp.eq.s32.totalorder %v993_v16, %v1020_v33 }
  0x52   :  { %500 = vperm.xlu1 %813, %v421_v34  }
  0x68   :  { %v44_v35 = vpop.trf.xlu0 }
  0x69   :  { %790 = vmatprep.mubr.msk.bf16.mxu0 %vm58_vm0, %v44_v35 }
  0x6c   :  { %v45_v36 = vpop.trf.xlu0 }
  0x6d   :  { %791 = vmatmul.mubr.msk.bf16.vlgmr.msra.gmra.mrb[0].mxu0 %vm58_vm0, %v45_v36 }
  0x70   :  { %v46_v37 = vpop.trf.xlu0 }
  0x71   :  { %794 = vmatprep.mubr.msk.bf16.mxu0 %vm58_vm0, %v46_v37  ;;  %v1029_v37 = vadd.s32 8, %v993_v16 }
  0x73   :  { %vm577_vm3 = vcmp.eq.s32.totalorder %v1029_v37, %v1020_v33 }
  0x74   :  { %v47_v38 = vpop.trf.xlu0 }
  0x75   :  { %795 = vmatmul.mubr.msk.bf16.gmra.mrb[4].mxu0 %vm58_vm0, %v47_v38 }
  0x78   :  { %v48_v39 = vpop.trf.xlu0 }
  0x79   :  { %798 = vmatprep.mubr.msk.bf16.mxu1 %vm58_vm0, %v48_v39 }
  0x7c   :  { %v49_v40 = vpop.trf.xlu0 }
  0x7d   :  { %799 = vmatmul.mubr.msk.bf16.vlgmr.msra.gmra.mrb[0].mxu1 %vm58_vm0, %v49_v40 }
  0x80   :  { %v50_v41 = vpop.trf.xlu0 }
  0x81   :  { %802 = vmatprep.mubr.msk.bf16.mxu1 %vm58_vm0, %v50_v41  ;;  %v296_v43 = vpop.permute.xlu1 %295 }
  0x82   :  { %v375_v10 = vmul.f32 %v761_v7, %v296_v43  ;;  %v1038_v43 = vadd.s32 24, %v993_v16 }
  0x84   :  { %v51_v42 = vpop.trf.xlu0  ;;  %vm579_vm4 = vcmp.eq.s32.totalorder %v1038_v43, %v1020_v33 }
  0x85   :  { %803 = vmatmul.mubr.msk.bf16.gmra.mrb[4].mxu1 %vm58_vm0, %v51_v42  ;;  %v301_v44 = vpop.permute.xlu1 %300 }
  0x86   :  { %v376_v11 = vmul.f32 %v761_v7, %v301_v44 }
  0x89   :  { %v426_v45 = vpop.permute.xlu1 %425 }
  0x8a   :  { %v509_v12 = vmul.f32 %v762_v9, %v426_v45 }
  0x8d   :  { %v431_v46 = vpop.permute.xlu1 %430 }
  0x8e   :  { %v510_v13 = vmul.f32 %v762_v9, %v431_v46 }
  0x91   :  { %v306_v47 = vpop.permute.xlu1 %305 }
  0x92   :  { %v377_v14 = vmul.f32 %v761_v7, %v306_v47 }
  0x95   :  { %v436_v48 = vpop.permute.xlu1 %435 }
  0x96   :  { %v511_v17 = vmul.f32 %v762_v9, %v436_v48 }
  0x99   :  { %v311_v49 = vpop.permute.xlu1 %310 }
  0x9a   :  { %v995_v18 = vmul.f32 %v761_v7, %v311_v49 }
  0x9d   :  { %v441_v50 = vpop.permute.xlu1 %440 }
  0x9e   :  { %v512_v19 = vmul.f32 %v762_v9, %v441_v50 }
  0xa1   :  { %v316_v51 = vpop.permute.xlu1 %315 }
  0xa2   :  { %v997_v20 = vmul.f32 %v761_v7, %v316_v51 }
  0xa5   :  { %v446_v52 = vpop.permute.xlu1 %445 }
  0xa6   :  { %v291_v53 = vpop.permute.xlu0 %290  ;;  %v999_v22 = vmul.f32 %v762_v9, %v446_v52 }
  0xa7   :  { %v374_v24 = vmul.f32 %v761_v7, %v291_v53 }
  0xa9   :  { %v321_v54 = vpop.permute.xlu1 %320 }
  0xaa   :  { %v451_v55 = vpop.permute.xlu0 %450  ;;  %v1001_v23 = vmul.f32 %v761_v7, %v321_v54 }
  0xab   :  { %v1003_v25 = vmul.f32 %v762_v9, %v451_v55 }
  0xad   :  { %v326_v56 = vpop.permute.xlu1 %325 }
  0xae   :  { %v456_v57 = vpop.permute.xlu0 %455  ;;  %v1005_v26 = vmul.f32 %v761_v7, %v326_v56 }
  0xaf   :  { %v1009_v28 = vmul.f32 %v762_v9, %v456_v57 }
  0xb1   :  { %v331_v58 = vpop.permute.xlu1 %330 }
  0xb2   :  { %v461_v59 = vpop.permute.xlu0 %460  ;;  %v1007_v27 = vmul.f32 %v761_v7, %v331_v58  ;;  %v1059_v58 = vadd.s32 48, %v993_v16 }
  0xb3   :  { %v1011_v29 = vmul.f32 %v762_v9, %v461_v59 }
  0xb4   :  { %vm582_vm6 = vcmp.eq.s32.totalorder %v1059_v58, %v1020_v33 }
  0xb5   :  { %v336_v60 = vpop.permute.xlu1 %335 }
  0xb6   :  { %v466_v61 = vpop.permute.xlu0 %465  ;;  %v1013_v30 = vmul.f32 %v761_v7, %v336_v60 }
  0xb7   :  { %v1015_v31 = vmul.f32 %v762_v9, %v466_v61 }
  0xb9   :  { %v341_v62 = vpop.permute.xlu1 %340 }
  0xba   :  { %v471_v63 = vpop.permute.xlu0 %470  ;;  %v1022_v34 = vmul.f32 %v761_v7, %v341_v62  ;;  %v1066_v62 = vadd.s32 32, %v993_v16 }
  0xbb   :  { %v1026_v36 = vmul.f32 %v762_v9, %v471_v63 }
  0xbc   :  { %vm580_vm5 = vcmp.eq.s32.totalorder %v1066_v62, %v1020_v33  ;;  %v1125_v62 = vadd.s32 88, %v993_v16 }
  0xbd   :  { %v346_v0 = vpop.permute.xlu1 %345 }
  0xbe   :  { %v476_v1 = vpop.permute.xlu0 %475  ;;  %v1024_v35 = vmul.f32 %v761_v7, %v346_v0  ;;  %vm587_vm12 = vcmp.eq.s32.totalorder %v1125_v62, %v1020_v33  ;;  %v573_v62 = vadd.s32 120, %v993_v16 }
  0xbf   :  { %v1033_v39 = vmul.f32 %v762_v9, %v476_v1 }
  0xc0   :  { %vm591_vm0 = vcmp.eq.s32.totalorder %v573_v62, %v1020_v33 }
  0xc1   :  { %v351_v2 = vpop.permute.xlu1 %350 }
  0xc2   :  { %v481_v3 = vpop.permute.xlu0 %480  ;;  %v1031_v38 = vmul.f32 %v761_v7, %v351_v2  ;;  %v1069_v2 = vadd.s32 56, %v993_v16 }
  0xc3   :  { %v1035_v40 = vmul.f32 %v762_v9, %v481_v3 }
  0xc4   :  { %vm583_vm7 = vcmp.eq.s32.totalorder %v1069_v2, %v1020_v33 }
  0xc5   :  { %v356_v4 = vpop.permute.xlu1 %355 }
  0xc6   :  { %v486_v5 = vpop.permute.xlu0 %485  ;;  %v1040_v44 = vmul.f32 %v761_v7, %v356_v4 }
  0xc7   :  { %v1044_v47 = vmul.f32 %v762_v9, %v486_v5 }
  0xc9   :  { %v361_v6 = vpop.permute.xlu1 %360 }
  0xca   :  { %v491_v15 = vpop.permute.xlu0 %490  ;;  %v1042_v45 = vmul.f32 %v761_v7, %v361_v6  ;;  %v1072_v6 = vadd.s32 40, %v993_v16 }
  0xcb   :  { %v1048_v51 = vmul.f32 %v762_v9, %v491_v15 }
  0xcc   :  { %vm581_vm8 = vcmp.eq.s32.totalorder %v1072_v6, %v1020_v33 }
  0xcd   :  { %v366_v21 = vpop.permute.xlu1 %365 }
  0xce   :  { %v496_v41 = vpop.permute.xlu0 %495  ;;  %v1046_v50 = vmul.f32 %v761_v7, %v366_v21 }
  0xcf   :  { %v1054_v54 = vmul.f32 %v762_v9, %v496_v41 }
  0xd1   :  { %v501_v46 = vpop.permute.xlu1 %500 }
  0xd2   :  { %v1061_v59 = vmul.f32 %v762_v9, %v501_v46 }
 0x140   :  { %v792_v42 = vpop.f32.mrb[0].mxu0 }
 0x141   :  { %v392_v48 = vmul.f32 %v792_v42, %v376_v11  ;;  %v117_v49 = vpop.f32.mrb[1].mxu0 }
 0x142   :  { %v390_v52 = vmul.f32 %v374_v24, %v117_v49  ;;  %v793_v53 = vpop.f32.mrb[2].mxu0 }
 0x143   :  { %v527_v55 = vsub.f32 %v392_v48, %v511_v17  ;;  %v393_v56 = vmul.f32 %v793_v53, %v377_v14  ;;  %v120_v57 = vpop.f32.mrb[3].mxu0 }
 0x144   :  { %v525_v60 = vsub.f32 %v390_v52, %v509_v12  ;;  %v391_v61 = vmul.f32 %v375_v10, %v120_v57 }
 0x145   :  { %v543_v63 = vmul.f32 %v527_v55, %v527_v55  ;;  %v765_v0 = vadd.f32 -1.0, %v527_v55  ;;  %v528_v1 = vsub.f32 %v393_v56, %v512_v19 }
 0x146   :  { %v541_v3 = vmul.f32 %v525_v60, %v525_v60  ;;  %v763_v4 = vadd.f32 -1.0, %v525_v60  ;;  %v526_v5 = vsub.f32 %v391_v61, %v510_v13  ;;  %v1081_v60 = vadd.s32 80, %v993_v16 }
 0x147   :  { %v594_v7 = vmul.f32 0.005, %v543_v63  ;;  %v645_v8 = vmul.f32 %v765_v0, %v765_v0  ;;  %v544_v9 = vmul.f32 %v528_v1, %v528_v1  ;;  %v766_v11 = vadd.f32 -1.0, %v528_v1 }
 0x148   :  { %v592_v10 = vmul.f32 0.005, %v541_v3  ;;  %v643_v12 = vmul.f32 %v763_v4, %v763_v4  ;;  %v542_v14 = vmul.f32 %v526_v5, %v526_v5  ;;  %v764_v15 = vadd.f32 -1.0, %v526_v5  ;;  %v796_v17 = vpop.f32.mrb[4].mxu0 }
 0x149   :  { %v661_v21 = vsub.f32 %v645_v8, %v594_v7  ;;  %v595_v19 = vmul.f32 0.005, %v544_v9  ;;  %v646_v24 = vmul.f32 %v766_v11, %v766_v11  ;;  %v396_v41 = vmul.f32 %v796_v17, %v1001_v23  ;;  %v133_v42 = vpop.f32.mrb[5].mxu0 }
 0x14a   :  { %v659_v13 = vsub.f32 %v643_v12, %v592_v10  ;;  %v593_v46 = vmul.f32 0.005, %v542_v14  ;;  %v644_v48 = vmul.f32 %v764_v15, %v764_v15  ;;  %v394_v49 = vmul.f32 %v995_v18, %v133_v42  ;;  %v797_v52 = vpop.f32.mrb[6].mxu0 }
 0x14b   :  { %v662_v53 = vsub.f32 %v646_v24, %v595_v19  ;;  %v531_v55 = vsub.f32 %v396_v41, %v1009_v28  ;;  %v397_v56 = vmul.f32 %v797_v52, %v1005_v26  ;;  %v136_v57 = vpop.f32.mrb[7].mxu0  ;;  %v1088_v0 = vadd.s32 64, %v993_v16 }
 0x14c   :  { %v675_v23 = vsel %vm576_vm2, %v659_v13, 0.0  ;;  %v660_v61 = vsub.f32 %v644_v48, %v593_v46  ;;  %v529_v63 = vsub.f32 %v394_v49, %v999_v22  ;;  %v677_v18 = vsel %vm578_vm1, %v661_v21, 0.0 }
 0x14d   :  { %v547_v28 = vmul.f32 %v531_v55, %v531_v55  ;;  %v769_v26 = vadd.f32 -1.0, %v531_v55  ;;  %v1094_v1 = vadd.s32 72, %v993_v16  ;;  %v691_v3 = vadd.f32 %v675_v23, %v592_v10 }
 0x14e   :  { %v676_v4 = vsel %vm577_vm3, %v660_v61, 0.0  ;;  %v545_v22 = vmul.f32 %v529_v63, %v529_v63  ;;  %v767_v5 = vadd.f32 -1.0, %v529_v63  ;;  %v678_v32 = vsel %vm579_vm4, %v662_v53, 0.0 }
 0x14f   :  { %v692_v8 = vadd.f32 %v676_v4, %v593_v46  ;;  %v1106_v9 = vmul.f32 0.005, %v547_v28  ;;  %v532_v11 = vsub.f32 %v397_v56, %v1011_v29  ;;  %v649_v37 = vmul.f32 %v769_v26, %v769_v26 }
 0x150   :  { %v596_v10 = vmul.f32 0.005, %v545_v22  ;;  %v647_v12 = vmul.f32 %v767_v5, %v767_v5  ;;  %v395_v14 = vmul.f32 %v997_v20, %v136_v57  ;;  %v800_v15 = vpop.f32.mrb[0].mxu1  ;;  %v693_v17 = vadd.f32 %v677_v18, %v594_v7 }
 0x151   :  { %v707_v21 = vadd.f32 %v692_v8, %v691_v3  ;;  %v548_v24 = vmul.f32 %v532_v11, %v532_v11  ;;  %v770_v41 = vadd.f32 -1.0, %v532_v11  ;;  %v149_v43 = vpop.f32.mrb[1].mxu1  ;;  %v400_v46 = vmul.f32 %v800_v15, %v1022_v34 }
 0x152   :  { %v663_v42 = vsub.f32 %v647_v12, %v596_v10  ;;  %v530_v13 = vsub.f32 %v395_v14, %v1003_v25  ;;  %v398_v29 = vmul.f32 %v1007_v27, %v149_v43  ;;  %v801_v48 = vpop.f32.mrb[2].mxu1  ;;  %v694_v49 = vadd.f32 %v678_v32, %v595_v19 }
 0x153   :  { %v708_v52 = vadd.f32 %v707_v21, %v693_v17  ;;  %v599_v53 = vmul.f32 0.005, %v548_v24  ;;  %v650_v55 = vmul.f32 %v770_v41, %v770_v41  ;;  %v152_v56 = vpop.f32.mrb[3].mxu1  ;;  %v665_v20 = vsub.f32 %v649_v37, %v1106_v9 }
 0x154   :  { %v679_v7 = vsel %vm580_vm5, %v663_v42, 0.0  ;;  %v546_v57 = vmul.f32 %v530_v13, %v530_v13  ;;  %v768_v23 = vadd.f32 -1.0, %v530_v13  ;;  %v535_v34 = vsub.f32 %v400_v46, %v1033_v39 }
 0x155   :  { %v695_v61 = vadd.f32 %v679_v7, %v596_v10  ;;  %v709_v25 = vadd.f32 %v708_v52, %v694_v49  ;;  %v666_v63 = vsub.f32 %v650_v55, %v599_v53  ;;  %v533_v19 = vsub.f32 %v398_v29, %v1015_v31 }
 0x156   :  { %v597_v27 = vmul.f32 0.005, %v546_v57  ;;  %v648_v18 = vmul.f32 %v768_v23, %v768_v23  ;;  %v401_v28 = vmul.f32 %v801_v48, %v1024_v35  ;;  %v551_v3 = vmul.f32 %v535_v34, %v535_v34 }
 0x157   :  { %v710_v26 = vadd.f32 %v709_v25, %v695_v61  ;;  %vm584_vm9 = vcmp.eq.s32.totalorder %v1088_v0, %v1020_v33  ;;  %v773_v22 = vadd.f32 -1.0, %v535_v34  ;;  %v549_v5 = vmul.f32 %v533_v19, %v533_v19 }
 0x158   :  { %v664_v4 = vsub.f32 %v648_v18, %v597_v27  ;;  %v771_v32 = vadd.f32 -1.0, %v533_v19  ;;  %v804_v8 = vpop.f32.mrb[4].mxu1  ;;  %v681_v39 = vsel %vm582_vm6, %v665_v20, 0.0  ;;  %v682_v31 = vsel %vm583_vm7, %v666_v63, 0.0 }
 0x159   :  { %vm586_vm10 = vcmp.eq.s32.totalorder %v1081_v60, %v1020_v33  ;;  %v536_v35 = vsub.f32 %v401_v28, %v1035_v40  ;;  %v399_v11 = vmul.f32 %v1013_v30, %v152_v56  ;;  %vm585_vm11 = vcmp.eq.s32.totalorder %v1094_v1, %v1020_v33  ;;  %v165_v37 = vpop.f32.mrb[5].mxu1 }
 0x15a   :  { %v680_v58 = vsel %vm581_vm8, %v664_v4, 0.0  ;;  %v600_v10 = vmul.f32 0.005, %v549_v5  ;;  %v651_v12 = vmul.f32 %v771_v32, %v771_v32  ;;  %v404_v2 = vmul.f32 %v804_v8, %v1042_v45  ;;  %v805_v14 = vpop.f32.mrb[6].mxu1 }
 0x15b   :  { %v696_v15 = vadd.f32 %v680_v58, %v597_v27  ;;  %v602_v17 = vmul.f32 0.005, %v551_v3  ;;  %v552_v21 = vmul.f32 %v536_v35, %v536_v35  ;;  %v774_v30 = vadd.f32 -1.0, %v536_v35  ;;  %v168_v40 = vpop.f32.mrb[7].mxu1 }
 0x15c   :  { %v653_v24 = vmul.f32 %v773_v22, %v773_v22  ;;  %v667_v41 = vsub.f32 %v651_v12, %v600_v10  ;;  %v534_v43 = vsub.f32 %v399_v11, %v1026_v36  ;;  %v402_v6 = vmul.f32 %v1031_v38, %v165_v37 }
 0x15d   :  { %v697_v42 = vadd.f32 %v681_v39, %v1106_v9  ;;  %v711_v13 = vadd.f32 %v710_v26, %v696_v15  ;;  %v603_v46 = vmul.f32 0.005, %v552_v21  ;;  %v654_v45 = vmul.f32 %v774_v30, %v774_v30 }
 0x15e   :  { %v683_v29 = vsel %vm584_vm9, %v667_v41, 0.0  ;;  %v550_v48 = vmul.f32 %v534_v43, %v534_v43  ;;  %v772_v49 = vadd.f32 -1.0, %v534_v43  ;;  %v539_v52 = vsub.f32 %v404_v2, %v1054_v54 }
 0x15f   :  { %v698_v55 = vadd.f32 %v682_v31, %v599_v53  ;;  %v712_v56 = vadd.f32 %v711_v13, %v697_v42  ;;  %v699_v20 = vadd.f32 %v683_v29, %v600_v10  ;;  %v570_v36 = vadd.s32 96, %v993_v16 }
 0x160   :  { %v669_v7 = vsub.f32 %v653_v24, %v602_v17  ;;  %v601_v38 = vmul.f32 0.005, %v550_v48  ;;  %v652_v57 = vmul.f32 %v772_v49, %v772_v49  ;;  %v537_v9 = vsub.f32 %v402_v6, %v1044_v47 }
 0x161   :  { %v713_v23 = vadd.f32 %v712_v56, %v698_v55  ;;  %v670_v61 = vsub.f32 %v654_v45, %v603_v46  ;;  %v405_v25 = vmul.f32 %v805_v14, %v1046_v50  ;;  %v572_v0 = vadd.s32 112, %v993_v16 }
 0x162   :  { %v668_v63 = vsub.f32 %v652_v57, %v601_v38  ;;  %v555_v34 = vmul.f32 %v539_v52, %v539_v52  ;;  %v777_v27 = vadd.f32 -1.0, %v539_v52  ;;  %v553_v54 = vmul.f32 %v537_v9, %v537_v9 }
 0x163   :  { %v714_v53 = vadd.f32 %v713_v23, %v699_v20  ;;  %v775_v18 = vadd.f32 -1.0, %v537_v9  ;;  %v540_v19 = vsub.f32 %v405_v25, %v1061_v59  ;;  %v403_v28 = vmul.f32 %v1040_v44, %v168_v40 }
 0x164   :  { %v685_v47 = vsel %vm586_vm10, %v669_v7, 0.0  ;;  %v684_v50 = vsel %vm585_vm11, %v668_v63, 0.0  ;;  %vm588_vm13 = vcmp.eq.s32.totalorder %v570_v36, %v1020_v33  ;;  %v604_v26 = vmul.f32 0.005, %v553_v54 }
 0x165   :  { %v700_v3 = vadd.f32 %v684_v50, %v601_v38  ;;  %v655_v4 = vmul.f32 %v775_v18, %v775_v18  ;;  %v556_v22 = vmul.f32 %v540_v19, %v540_v19  ;;  %v778_v5 = vadd.f32 -1.0, %v540_v19 }
 0x166   :  { %v686_v59 = vsel %vm587_vm12, %v670_v61, 0.0  ;;  %v606_v44 = vmul.f32 0.005, %v555_v34  ;;  %v657_v32 = vmul.f32 %v777_v27, %v777_v27  ;;  %v538_v60 = vsub.f32 %v403_v28, %v1048_v51 }
 0x167   :  { %v701_v8 = vadd.f32 %v685_v47, %v602_v17  ;;  %v715_v39 = vadd.f32 %v714_v53, %v700_v3  ;;  %v671_v31 = vsub.f32 %v655_v4, %v604_v26  ;;  %v571_v1 = vadd.s32 104, %v993_v16 }
 0x168   :  { %v607_v35 = vmul.f32 0.005, %v556_v22  ;;  %v658_v11 = vmul.f32 %v778_v5, %v778_v5  ;;  %v554_v37 = vmul.f32 %v538_v60, %v538_v60  ;;  %v776_v58 = vadd.f32 -1.0, %v538_v60 }
 0x169   :  { %v702_v10 = vadd.f32 %v686_v59, %v603_v46  ;;  %v716_v12 = vadd.f32 %v715_v39, %v701_v8  ;;  %v687_v2 = vsel %vm588_vm13, %v671_v31, 0.0  ;;  %v673_v14 = vsub.f32 %v657_v32, %v606_v44 }
 0x16a   :  { %v703_v15 = vadd.f32 %v687_v2, %v604_v26  ;;  %v605_v21 = vmul.f32 0.005, %v554_v37  ;;  %v656_v51 = vmul.f32 %v776_v58, %v776_v58  ;;  %vm589_vm14 = vcmp.eq.s32.totalorder %v571_v1, %v1020_v33 }
 0x16b   :  { %vm590_vm15 = vcmp.eq.s32.totalorder %v572_v0, %v1020_v33  ;;  %v717_v17 = vadd.f32 %v716_v12, %v702_v10  ;;  %v674_v40 = vsub.f32 %v658_v11, %v607_v35  ;;  %vm731_vm1 = vcmp.eq.s32.totalorder %v993_v16, 0 }
 0x16c   :  { %v672_v30 = vsub.f32 %v656_v51, %v605_v21  ;;  %v689_v43 = vsel %vm590_vm15, %v673_v14, 0.0  ;;  %vm732_vm2 = vcmp.eq.s32.totalorder %v1020_v33, 0 }
 0x16d   :  { %v718_v24 = vadd.f32 %v717_v17, %v703_v15  ;;  %v690_v42 = vsel %vm591_vm0, %v674_v40, 0.0  ;;  %v705_v13 = vadd.f32 %v689_v43, %v606_v44  ;;  %vm733_vm3 = vmand %vm731_vm1, %vm732_vm2 }
 0x16e   :  { %v688_v41 = vsel %vm589_vm14, %v672_v30, 0.0  ;;  %v706_v45 = vadd.f32 %v690_v42, %v607_v35 }
 0x16f   :  { %v704_v6 = vadd.f32 %v688_v41, %v605_v21 }
 0x171   :  { %v719_v46 = vadd.f32 %v718_v24, %v704_v6 }
 0x173   :  { %v720_v29 = vadd.f32 %v719_v46, %v705_v13 }
 0x175   :  { %v721_v48 = vadd.f32 %v720_v29, %v706_v45 }
 0x177   :  { %722 = vadd.xlane.f32.xlu0 %v721_v48 }
 0x204   :  { %v723_v49 = vpop.xlane.xlu0 %722 }
 0x205   :  { %v724_v52 = vrot.slane %v723_v49, 4 }
 0x207   :  { %v725_v55 = vadd.f32 %v724_v52, %v723_v49 }
 0x209   :  { %v726_v56 = vrot.slane %v725_v55, 2 }
 0x20b   :  { %v727_v20 = vadd.f32 %v726_v56, %v725_v55 }
 0x20d   :  { %v728_v36 = vrot.slane %v727_v20, 1 }
 0x20f   :  { %v729_v7 = vadd.f32 %v728_v36, %v727_v20 }
 0x211   :  { %808 = vpush %v729_v7 }
 0x242   :  { %s809_s13 = spop %808 }
 0x243   :  { %v734_v38 = vstv %s809_s13 }
 0x244   :  { %v735_v57 = vsel %vm733_vm3, %v734_v38, 0.0 }
 0x245   :  { %736 = vst [vmem:[#allocation3] sm:$0xff] %v735_v57 }
 0x246   :  { %827 = shalt.err (!%p824_p4)
}
 0x247   :  { %s828_s17 = scalar_lea.hbm %s1196_s6, 128 }
 0x248   :  { %p829_p5 = scmp.ne.s32.totalorder %s1196_s6, %s828_s17  ;;  %p832_p6 = scmp.lt.u32.totalorder %s828_s17, %s1196_s6 }
 0x24a   :  { %p834_p7 = pnand %p832_p6, %p829_p5 }
 0x24c   :  { %837 = shalt.err (!%p834_p7)
}
 0x24d   :  { %746 = dma.vmem_to_hbm [thread:$0]  %s744_s5, 128, %s1196_s6, [#allocation4]  }
 0x24e   :  { %838 = dma.done.wait [#allocation4], 128  }
 0x24f   :  { %839 = vsyncadd [#allocation4], 4294967168 }
 0x250   :  { %750 = vsyncpa [#allocation4], 1 }

</bundles_post_ra>
